<compile_context>
chip_gen: v7x
topology: tpu7x:2x2x1
jax: 0.10.0
libtpu: 0.0.40
codegen_flags: <defaults>
</compile_context>

<pallas_src>
import jax
import jax.numpy as jnp
from jax.experimental import pallas as pl
from jax.experimental.pallas import tpu as pltpu


def _mish_kernel(x_ref, o_ref):
    x = x_ref[...].astype(jnp.float32)
    u = jnp.exp(jnp.minimum(x, -x))        # exp(-|x|); min(x,-x) saves a VALU op vs -abs(x)
    u2 = u * u
    t = 2.0 * u
    pos = x >= 0.0
    num = jnp.where(pos, 1.0, u2) + t
    den = num + 2.0 * jnp.where(pos, u2, 1.0)
    r = pl.reciprocal(den, approx=True)    # EUP
    r = r * (2.0 - den * r)                # one Newton step; den in (1, 5] -> ~f32 accuracy
    o_ref[...] = (x * num * r).astype(o_ref.dtype)


_LANE_CANDS = (2048, 1024, 512, 256, 128)


def _widest_lanes(n: int):
    """Widest lane-dense last dim that divides n exactly (zero-copy reshape)."""
    for cand in _LANE_CANDS:
        if n % cand == 0:
            return cand
    return None


def _chip_defaults():
    """(target_block_bytes, vmem_limit_bytes) tuned per TPU generation."""
    kind = ""
    try:
        kind = jax.devices()[0].device_kind.lower()
    except Exception:  # pragma: no cover - conservative fallback
        pass
    if "v7" in kind or "7x" in kind:
        # ~3.2 TB/s HBM per TC: big blocks; 4 * 6 MiB double-buffered < 48 MiB.
        return 6 * 1024 * 1024, 48 << 20
    if "v6" in kind:
        # 4 MiB blocks -> 16 MiB double-buffered, fits the 32 MiB scoped default.
        return 4 * 1024 * 1024, 32 << 20
    # v5e (and unknown): scoped VMEM default is only 16 MiB -> keep 2 MiB blocks.
    return 2 * 1024 * 1024, None


def _mish_2d(x2d: jax.Array, target_block_bytes: int, vmem_limit_bytes) -> jax.Array:
    rows, lanes = x2d.shape
    itemsize = jnp.dtype(x2d.dtype).itemsize

    # ~target_block_bytes per step; multiple of 32 rows covers f32/bf16/fp8 packing.
    tm = max(32, (target_block_bytes // (lanes * itemsize)) // 32 * 32)
    if rows >= 64:
        # Keep >= ~4 grid blocks so both v7x TensorCores get work and the
        # prefetch/writeback pipeline stays active even for single-block sizes.
        quarter = max(32, (pl.cdiv(rows, 4) + 31) // 32 * 32)
        tm = min(tm, quarter)
    tm = min(tm, rows)
    grid = (pl.cdiv(rows, tm),)

    cp_kwargs = dict(dimension_semantics=("parallel",))
    if vmem_limit_bytes is not None:
        cp_kwargs["vmem_limit_bytes"] = vmem_limit_bytes

    # TODO(synk): optional experiment - pipeline_mode=pl.Buffered(3) on the input
    # BlockSpec can hide DMA turnaround on v5e at small blocks (0-5%, measure first).
    return pl.pallas_call(
        _mish_kernel,
        out_shape=jax.ShapeDtypeStruct((rows, lanes), x2d.dtype),
        grid=grid,
        in_specs=[pl.BlockSpec((tm, lanes), lambda i: (i, 0))],
        out_specs=pl.BlockSpec((tm, lanes), lambda i: (i, 0)),
        compiler_params=pltpu.CompilerParams(**cp_kwargs),
    )(x2d)


def _mish_jnp(x: jax.Array) -> jax.Array:
    """Plain-JAX Mish (used for tiny ragged tails and as the reference)."""
    xf = x.astype(jnp.float32)
    sp = jnp.maximum(xf, 0.0) + jnp.log1p(jnp.exp(-jnp.abs(xf)))
    return (xf * jnp.tanh(sp)).astype(x.dtype)


def mish(x: jax.Array) -> jax.Array:
    """Elementwise Mish. Accepts any shape (e.g. NCHW); returns same shape/dtype."""
    orig_shape = x.shape
    n = x.size
    if n == 0:
        return x

    target_block_bytes, vmem_limit_bytes = _chip_defaults()
    flat = jnp.ravel(x)

    lanes = _widest_lanes(n)
    if lanes is not None:
        out2d = _mish_2d(flat.reshape(n // lanes, lanes),
                         target_block_bytes, vmem_limit_bytes)
        return out2d.reshape(orig_shape)

    # Ragged size: kernel on the largest 128-divisible prefix (zero-copy
    # reshape), <=127-element tail via plain jnp -- no pad/concatenate of the
    # input and no trailing slice of the output.
    # TODO(synk): folding the tail into the last block with a masked store
    # would also remove the small output concatenate below.
    rem = n % 128
    prefix = n - rem
    tail_out = _mish_jnp(flat[prefix:])
    if prefix == 0:
        return tail_out.reshape(orig_shape)
    p_lanes = _widest_lanes(prefix)  # prefix % 128 == 0 -> never None
    head2d = _mish_2d(flat[:prefix].reshape(prefix // p_lanes, p_lanes),
                      target_block_bytes, vmem_limit_bytes)
    out = jnp.concatenate([head2d.reshape(-1), tail_out])
    return out.reshape(orig_shape)


if __name__ == "__main__":
    key = jax.random.PRNGKey(0)
    # NCHW input consistent with CSPDarknet53 usage: batch=2, channels=4, 16x16.
    x = jax.random.normal(key, (2, 4, 16, 16), dtype=jnp.float32)

    out = jax.block_until_ready(mish(x))
    ref = _mish_jnp(x)
    assert out.shape == x.shape and out.dtype == x.dtype
    assert jnp.allclose(out, ref, atol=1e-4, rtol=1e-4)

    # Shape whose element count is not a multiple of 128 (prefix + jnp-tail path).
    x2 = jax.random.normal(jax.random.PRNGKey(1), (3, 5, 7, 11), dtype=jnp.float32)
    out2 = jax.block_until_ready(mish(x2))
    assert jnp.allclose(out2, _mish_jnp(x2), atol=1e-4, rtol=1e-4)

    # A larger multi-block case to exercise the grid/pipelining path.
    x3 = jax.random.normal(jax.random.PRNGKey(2), (8, 32, 32, 32), dtype=jnp.float32)
    out3 = jax.block_until_ready(mish(x3))
    assert jnp.allclose(out3, _mish_jnp(x3), atol=1e-4, rtol=1e-4)

    print("KERNEL_OK")
</pallas_src>

<mosaic_0001>
module attributes {stable_mosaic.version = 11 : i64} {
  func.func @_mish_kernel(%arg0: i32, %arg1: memref<1x2048xf32, #tpu.memory_space<vmem>>, %arg2: memref<1x2048xf32, #tpu.memory_space<vmem>>) attributes {dimension_semantics = [#tpu.dimension_semantics<parallel>], iteration_bounds = array<i64: 1>, scalar_prefetch = 0 : i64, scratch_operands = 0 : i64, tpu.core_type = #tpu.core_type<tc>, window_params = [{transform_indices = @transform_0, window_bounds = array<i64: 1, 2048>}, {transform_indices = @transform_1, window_bounds = array<i64: 1, 2048>}]} {
    %c0 = arith.constant 0 : index
    %c0_0 = arith.constant 0 : index
    %0 = vector.load %arg1[%c0, %c0_0] : memref<1x2048xf32, #tpu.memory_space<vmem>>, vector<1x2048xf32>
    %cst = arith.constant 0.000000e+00 : f32
    %1 = vector.broadcast %cst : f32 to vector<1x2048xf32>
    %2 = arith.subf %1, %0 : vector<1x2048xf32>
    %3 = arith.minimumf %0, %2 : vector<1x2048xf32>
    %4 = math.exp %3 : vector<1x2048xf32>
    %5 = arith.mulf %4, %4 : vector<1x2048xf32>
    %cst_1 = arith.constant 2.000000e+00 : f32
    %6 = vector.broadcast %cst_1 : f32 to vector<1x2048xf32>
    %7 = arith.mulf %6, %4 : vector<1x2048xf32>
    %cst_2 = arith.constant 0.000000e+00 : f32
    %8 = vector.broadcast %cst_2 : f32 to vector<1x2048xf32>
    %9 = arith.cmpf oge, %0, %8 : vector<1x2048xf32>
    %cst_3 = arith.constant 1.000000e+00 : f32
    %10 = vector.broadcast %cst_3 : f32 to vector<1x2048xf32>
    %11 = arith.select %9, %10, %5 : vector<1x2048xi1>, vector<1x2048xf32>
    %12 = arith.addf %11, %7 : vector<1x2048xf32>
    %cst_4 = arith.constant 1.000000e+00 : f32
    %13 = vector.broadcast %cst_4 : f32 to vector<1x2048xf32>
    %14 = arith.select %9, %5, %13 : vector<1x2048xi1>, vector<1x2048xf32>
    %cst_5 = arith.constant 2.000000e+00 : f32
    %15 = vector.broadcast %cst_5 : f32 to vector<1x2048xf32>
    %16 = arith.mulf %15, %14 : vector<1x2048xf32>
    %17 = arith.addf %12, %16 : vector<1x2048xf32>
    %18 = tpu.reciprocal %17 {approx = true} : vector<1x2048xf32> -> vector<1x2048xf32>
    %19 = arith.mulf %17, %18 : vector<1x2048xf32>
    %cst_6 = arith.constant 2.000000e+00 : f32
    %20 = vector.broadcast %cst_6 : f32 to vector<1x2048xf32>
    %21 = arith.subf %20, %19 : vector<1x2048xf32>
    %22 = arith.mulf %18, %21 : vector<1x2048xf32>
    %23 = arith.mulf %0, %12 : vector<1x2048xf32>
    %24 = arith.mulf %23, %22 : vector<1x2048xf32>
    %c0_7 = arith.constant 0 : index
    %c0_8 = arith.constant 0 : index
    %25 = vector.load %arg2[%c0_7, %c0_8] : memref<1x2048xf32, #tpu.memory_space<vmem>>, vector<1x2048xf32>
    tpu.vector_store %arg2[%c0_7, %c0_8], %24 {strides = array<i32>} : memref<1x2048xf32, #tpu.memory_space<vmem>>, vector<1x2048xf32>,
    return
  }
  func.func @transform_0(%arg0: i32) -> (i32, i32) {
    %c0_i32 = arith.constant 0 : i32
    %c0_i32_0 = arith.constant 0 : i32
    return %arg0, %c0_i32 : i32, i32
  }
  func.func @transform_1(%arg0: i32) -> (i32, i32) {
    %c0_i32 = arith.constant 0 : i32
    %c0_i32_0 = arith.constant 0 : i32
    return %arg0, %c0_i32 : i32, i32
  }
}

</mosaic_0001>

<bundles_post_ra>
// kernel: tpu_custom_call.1
= control target key start
LH: loop header
LB: loop body
LE: loop exit
PB: predicated region body
PF: predicated region fallthrough
CT: control target
= control target key end

     0   :  { %6 = vsyncpa [#allocation3], 0  ;;  %s170_s0 = inlined_call_operand.hbm [shape: f32[1,2048], index: 0, kind: input, shape index: {}]   ;;  %s171_s1 = inlined_call_operand.hbm [shape: f32[1,2048], index: 1, kind: output, shape index: {}]  }
   0x1   :  { %7 = vsyncpa [#allocation4], 0  ;;  %s134_s6 = smov [#allocation2]   ;;  %s86_s10 = scalar_lea.hbm %s170_s0, 256 }
   0x2   :  { %s14_s7 = sshll.u32 %s134_s6, 4  ;;  %p87_p0 = scmp.ne.s32.totalorder %s170_s0, %s86_s10  ;;  %s15_s7 = int_to_ptr.vmem [resolvable:$true] %s14_s7 }
   0x3   :  { %p90_p1 = scmp.lt.u32.totalorder %s86_s10, %s170_s0 }
   0x5   :  { %p92_p2 = pnand %p90_p1, %p87_p0 }
   0x7   :  { %95 = shalt.err (!%p92_p2)
}
   0x8   :  { %s96_s15 = scalar_lea.vmem %s15_s7, 256  ;;  %p101_p4 = scmp.lt.s32.totalorder %s15_s7, %s15_s7 }
   0x9   :  { %p97_p3 = scmp.ne.s32.totalorder %s15_s7, %s96_s15  ;;  %p102_p5 = scmp.lt.s32.totalorder %s96_s15, %s96_s15 }
   0xb   :  { %p103_p6 = por %p102_p5, %p101_p4 }
   0xd   :  { %p104_p7 = pnand %p103_p6, %p97_p3 }
   0xf   :  { %107 = shalt.err (!%p104_p7)
}
  0x10   :  { %17 = dma.hbm_to_vmem [thread:$0]  %s170_s0, 256, %s15_s7, [#allocation3]  }
  0x11   :  { %130 = dma.done.wait [#allocation3], 256  }
  0x12   :  { %131 = vsyncadd [#allocation3], 4294967040  ;;  %v21_v0 = vld [vmem:[#allocation2] sm:$0xff]  ;;  %v22_v1 = vld [vmem:[#allocation2 + $0x8] sm:$0xff]  ;;  %s135_s0 = smov [#allocation5]  }
  0x13   :  { %v23_v2 = vsub.f32 0.0, %v21_v0  ;;  %v24_v3 = vsub.f32 0.0, %v22_v1  ;;  %vm35_vm0 = vcmp.ge.f32.partialorder %v21_v0, 0.0  ;;  %vm36_vm1 = vcmp.ge.f32.partialorder %v22_v1, 0.0  ;;  %s67_s18 = sshll.u32 %s135_s0, 4  ;;  %s68_s18 = int_to_ptr.vmem [resolvable:$true] %s67_s18 }
  0x14   :  { %s108_s19 = scalar_lea.vmem %s68_s18, 256  ;;  %p113_p9 = scmp.lt.s32.totalorder %s68_s18, %s68_s18 }
  0x15   :  { %v25_v4 = vmin.f32 %v21_v0, %v23_v2  ;;  %v26_v5 = vmin.f32 %v22_v1, %v24_v3  ;;  %p109_p8 = scmp.ne.s32.totalorder %s68_s18, %s108_s19  ;;  %p114_p10 = scmp.lt.s32.totalorder %s108_s19, %s108_s19 }
  0x17   :  { %v27_v6 = vmul.f32 1.442695, %v25_v4  ;;  %v29_v7 = vmul.f32 1.442695, %v26_v5  ;;  %p115_p11 = por %p114_p10, %p113_p9 }
  0x19   :  { %78 = vpow2.f32 %v27_v6  ;;  %p116_p12 = pnand %p115_p11, %p109_p8 }
  0x1a   :  { %80 = vpow2.f32 %v29_v7 }
  0x23   :  { %v79_v8 = vpop.eup %78 }
  0x24   :  { %v81_v9 = vpop.eup %80  ;;  %v31_v10 = vmul.f32 %v79_v8, %v79_v8  ;;  %v33_v11 = vmul.f32 2.0, %v79_v8 }
  0x25   :  { %v32_v12 = vmul.f32 %v81_v9, %v81_v9  ;;  %v34_v13 = vmul.f32 2.0, %v81_v9 }
  0x26   :  { %v37_v14 = vsel %vm35_vm0, 1.0, %v31_v10  ;;  %v41_v15 = vsel %vm35_vm0, %v31_v10, 1.0 }
  0x27   :  { %v39_v16 = vadd.f32 %v37_v14, %v33_v11  ;;  %v43_v17 = vmul.f32 2.0, %v41_v15  ;;  %v38_v18 = vsel %vm36_vm1, 1.0, %v32_v12  ;;  %v42_v19 = vsel %vm36_vm1, %v32_v12, 1.0 }
  0x28   :  { %v40_v20 = vadd.f32 %v38_v18, %v34_v13  ;;  %v44_v21 = vmul.f32 2.0, %v42_v19 }
  0x29   :  { %v45_v22 = vadd.f32 %v43_v17, %v39_v16  ;;  %v55_v29 = vmul.f32 %v39_v16, %v21_v0 }
  0x2a   :  { %v46_v23 = vadd.f32 %v44_v21, %v40_v20  ;;  %v56_v31 = vmul.f32 %v40_v20, %v22_v1 }
  0x2b   :  { %82 = vrcp.f32 %v45_v22 }
  0x2c   :  { %84 = vrcp.f32 %v46_v23 }
  0x35   :  { %v83_v24 = vpop.eup %82 }
  0x36   :  { %v85_v25 = vpop.eup %84  ;;  %v49_v26 = vmul.f32 %v83_v24, %v45_v22 }
  0x37   :  { %v50_v27 = vmul.f32 %v85_v25, %v46_v23 }
  0x38   :  { %v51_v28 = vsub.f32 2.0, %v49_v26 }
  0x39   :  { %v52_v30 = vsub.f32 2.0, %v50_v27 }
  0x3a   :  { %v53_v32 = vmul.f32 %v83_v24, %v51_v28 }
  0x3b   :  { %v54_v33 = vmul.f32 %v85_v25, %v52_v30 }
  0x3c   :  { %v57_v34 = vmul.f32 %v55_v29, %v53_v32 }
  0x3d   :  { %v58_v35 = vmul.f32 %v56_v31, %v54_v33 }
  0x3e   :  { %59 = vst [vmem:[#allocation5] sm:$0xff] %v57_v34 }
  0x3f   :  { %60 = vst [vmem:[#allocation5 + $0x8] sm:$0xff] %v58_v35 }
  0x40   :  { %119 = shalt.err (!%p116_p12)
}
  0x41   :  { %s120_s22 = scalar_lea.hbm %s171_s1, 256 }
  0x42   :  { %p121_p13 = scmp.ne.s32.totalorder %s171_s1, %s120_s22  ;;  %p124_p0 = scmp.lt.u32.totalorder %s120_s22, %s171_s1 }
  0x44   :  { %p126_p1 = pnand %p124_p0, %p121_p13 }
  0x46   :  { %129 = shalt.err (!%p126_p1)
}
  0x47   :  { %70 = dma.vmem_to_hbm [thread:$0]  %s68_s18, 256, %s171_s1, [#allocation4]  }
  0x48   :  { %132 = dma.done.wait [#allocation4], 256  }
  0x49   :  { %133 = vsyncadd [#allocation4], 4294967040 }
  0x4a   :  { %74 = vsyncpa [#allocation3], 1 }
  0x4b   :  { %75 = vsyncpa [#allocation4], 1 }

</bundles_post_ra>
